<compile_context>
chip_gen: v6e
topology: v6e:2x2x1
jax: 0.10.0
libtpu: 0.0.40
codegen_flags: <defaults>
</compile_context>

<pallas_src>
import jax
import jax.numpy as jnp
from jax.experimental import pallas as pl
from jax.experimental.pallas import tpu as pltpu


def _se_kernel(x_ref, w1t_ref, w2t_ref, o_ref):
    # x_ref   : (NB, C, HW)   spatial flattened on the lane axis
    # w1t_ref : (C, C_red)    fc1 weight, pre-transposed (tiny, resident)
    # w2t_ref : (C_red, C)    fc2 weight, pre-transposed (tiny, resident)
    # o_ref   : (NB, C, HW)

    # AdaptiveAvgPool2d(1): mean over spatial positions, f32 accumulation.
    pooled = jnp.mean(x_ref[...], axis=-1, dtype=jnp.float32)      # (NB, C)

    # fc1 (1x1 conv == matmul) + ReLU -> (NB, C_red)
    s1 = jnp.dot(pooled, w1t_ref[...], preferred_element_type=jnp.float32)
    s1 = jnp.maximum(s1, 0.0)

    # fc2 + Sigmoid -> per-channel gate (NB, C)
    s2 = jnp.dot(s1, w2t_ref[...], preferred_element_type=jnp.float32)
    gate = jax.nn.sigmoid(s2)

    # Gate x in its native dtype; no f32 materialization of the full tile.
    o_ref[...] = x_ref[...] * gate[:, :, None].astype(o_ref.dtype)


def _round_up(x, m):
    return (x + m - 1) // m * m


def _sublane_multiple(dtype):
    # Packed-dtype sublane granularity: f32 -> 8, bf16/f16 -> 16, 1-byte -> 32.
    return {4: 8, 2: 16, 1: 32}.get(jnp.dtype(dtype).itemsize, 8)


def _padded_tile_bytes(rows, cols, dtype):
    """Bytes of one (rows, cols) tile once padded to the VMEM (sublane, lane) grid."""
    r = _round_up(max(rows, 1), _sublane_multiple(dtype))
    c = _round_up(max(cols, 1), 128)
    return r * c * jnp.dtype(dtype).itemsize


def se_module_pallas(x_nchw, w1, w2, *,
                     block_budget_bytes=8 * 1024 * 1024,
                     donate_input=False):
    """x_nchw: (N, C, H, W); w1: (C_red, C); w2: (C, C_red).  Returns NCHW.

    donate_input=True aliases the output onto x's HBM buffer; only use it when
    the caller actually donates x (jit donate_argnums / dead temporary),
    otherwise XLA inserts a defensive full copy that adds ~50% HBM traffic.
    """
    N, C, H, W = x_nchw.shape
    C_red, C_in = w1.shape
    assert C_in == C and w2.shape == (C, C_red)
    HW = H * W

    # Contiguous reshape only -- no transpose, no extra HBM traffic.
    x = x_nchw.reshape(N, C, HW)
    w1t = jnp.transpose(w1)   # (C, C_red)   tiny one-time glue
    w2t = jnp.transpose(w2)   # (C_red, C)

    # --- VMEM accounting against *padded* tiles (lane->128, sublane by dtype).
    per_image_bytes = _padded_tile_bytes(C, HW, x.dtype)
    weights_bytes = (_padded_tile_bytes(C, C_red, w1t.dtype)
                     + _padded_tile_bytes(C_red, C, w2t.dtype))
    headroom = 2 * 1024 * 1024  # compiler scratch, semaphores, etc.

    try:
        vmem_cap = int(pltpu.get_tpu_info().vmem_capacity_bytes)
    except Exception:  # interpret mode / older runtimes: assume 128 MiB class.
        vmem_cap = 128 * 1024 * 1024

    # Heuristic: 64 MiB-per-TC chips (v7x) have 2 TensorCores sharing the grid.
    two_tensorcores = vmem_cap <= 80 * 1024 * 1024

    # Per-block budget: caller budget, clipped so input+output double-buffered
    # tiles (4x block) + resident weights + headroom stay <= ~60% of VMEM.
    cap_budget = (int(0.60 * vmem_cap) - weights_bytes - headroom) // 4
    per_block_budget = max(per_image_bytes, min(block_budget_bytes, cap_budget))

    # Batch elements per grid step (ragged last block handled by cdiv grid).
    nb = max(1, min(N, per_block_budget // per_image_bytes))
    if two_tensorcores and N >= 2:
        # Keep >= 2 grid steps so the "parallel" axis shards across both TCs.
        nb = min(nb, pl.cdiv(N, 2))
    grid = (pl.cdiv(N, nb),)

    block_bytes = nb * per_image_bytes
    vmem_needed = 4 * block_bytes + weights_bytes + headroom
    vmem_limit = int(min(max(vmem_needed, 16 * 1024 * 1024),
                         vmem_cap - 4 * 1024 * 1024))

    itemsize = jnp.dtype(x.dtype).itemsize
    cost = pl.CostEstimate(
        flops=2 * N * C * HW + 4 * N * C * C_red,
        transcendentals=N * C,                       # sigmoid
        bytes_accessed=2 * N * C * HW * itemsize
                       + 2 * C * C_red * jnp.dtype(w1.dtype).itemsize,
    )

    call_kwargs = {}
    if donate_input:
        call_kwargs["input_output_aliases"] = {0: 0}

    out = pl.pallas_call(
        _se_kernel,
        out_shape=jax.ShapeDtypeStruct((N, C, HW), x.dtype),
        grid_spec=pltpu.PrefetchScalarGridSpec(
            num_scalar_prefetch=0,
            grid=grid,
            in_specs=[
                pl.BlockSpec((nb, C, HW), lambda n: (n, 0, 0)),
                pl.BlockSpec((C, C_red), lambda n: (0, 0)),
                pl.BlockSpec((C_red, C), lambda n: (0, 0)),
            ],
            out_specs=pl.BlockSpec((nb, C, HW), lambda n: (n, 0, 0)),
        ),
        compiler_params=pltpu.CompilerParams(
            dimension_semantics=("parallel",),
            vmem_limit_bytes=vmem_limit,
        ),
        cost_estimate=cost,
        **call_kwargs,
    )(x, w1t, w2t)

    return out.reshape(N, C, H, W)


def se_module_ref(x_nchw, w1, w2):
    """Pure-JAX reference mirroring the PyTorch forward."""
    pooled = jnp.mean(x_nchw, axis=(2, 3))                  # (N, C)
    s1 = jnp.maximum(pooled @ w1.T, 0.0)                    # (N, C_red)
    gate = jax.nn.sigmoid(s1 @ w2.T)                        # (N, C)
    return x_nchw * gate[:, :, None, None]


if __name__ == "__main__":
    key = jax.random.PRNGKey(0)

    # --- Test 1: basic shapes (batch=2, channels=4, spatial=16x16, r=2).
    N, C, H, W = 2, 4, 16, 16
    reduction = 2
    C_red = C // reduction

    kx, k1, k2, kx2 = jax.random.split(key, 4)
    x = jax.random.normal(kx, (N, C, H, W), dtype=jnp.float32)
    # Conv2d(kernel_size=1, bias=False) weights == dense (out_ch, in_ch).
    w1 = jax.random.normal(k1, (C_red, C), dtype=jnp.float32) * 0.1
    w2 = jax.random.normal(k2, (C, C_red), dtype=jnp.float32) * 0.1

    ref = jax.block_until_ready(se_module_ref(x, w1, w2))
    out = jax.block_until_ready(se_module_pallas(x, w1, w2))
    assert out.shape == (N, C, H, W)
    assert jnp.allclose(out, ref, atol=1e-5, rtol=1e-5)

    # --- Test 2: odd batch + tiny block budget to force a multi-step grid
    # with a ragged last block (exercises the cdiv path).
    N2, C2 = 3, 8
    x2 = jax.random.normal(kx2, (N2, C2, H, W), dtype=jnp.float32)
    w1b = jax.random.normal(k1, (C2 // reduction, C2), dtype=jnp.float32) * 0.1
    w2b = jax.random.normal(k2, (C2, C2 // reduction), dtype=jnp.float32) * 0.1

    ref2 = jax.block_until_ready(se_module_ref(x2, w1b, w2b))
    out2 = jax.block_until_ready(
        se_module_pallas(x2, w1b, w2b, block_budget_bytes=16 * 1024))
    assert out2.shape == (N2, C2, H, W)
    assert jnp.allclose(out2, ref2, atol=1e-5, rtol=1e-5)

    print("KERNEL_OK")
</pallas_src>

<mosaic_0001>
module attributes {stable_mosaic.version = 11 : i64} {
  func.func @_se_kernel(%arg0: i32, %arg1: memref<2x4x256xf32, #tpu.memory_space<vmem>>, %arg2: memref<4x2xf32, #tpu.memory_space<vmem>>, %arg3: memref<2x4xf32, #tpu.memory_space<vmem>>, %arg4: memref<2x4x256xf32, #tpu.memory_space<vmem>>) attributes {dimension_semantics = [#tpu.dimension_semantics<parallel>], iteration_bounds = array<i64: 1>, scalar_prefetch = 0 : i64, scratch_operands = 0 : i64, tpu.core_type = #tpu.core_type<tc>, window_params = [{transform_indices = @transform_0, window_bounds = array<i64: 2, 4, 256>}, {pipeline_mode = #tpu.pipeline_mode<synchronous>, transform_indices = @transform_1, window_bounds = array<i64: 4, 2>}, {pipeline_mode = #tpu.pipeline_mode<synchronous>, transform_indices = @transform_2, window_bounds = array<i64: 2, 4>}, {transform_indices = @transform_3, window_bounds = array<i64: 2, 4, 256>}]} {
    %c0 = arith.constant 0 : index
    %c0_0 = arith.constant 0 : index
    %c0_1 = arith.constant 0 : index
    %0 = vector.load %arg1[%c0, %c0_0, %c0_1] : memref<2x4x256xf32, #tpu.memory_space<vmem>>, vector<2x4x256xf32>
    %cst = arith.constant dense<0.000000e+00> : vector<2x4xf32>
    %1 = vector.multi_reduction <add>, %0, %cst [2] : vector<2x4x256xf32> to vector<2x4xf32>
    %cst_2 = arith.constant 2.560000e+02 : f32
    %2 = vector.broadcast %cst_2 : f32 to vector<2x4xf32>
    %3 = arith.divf %1, %2 : vector<2x4xf32>
    %c0_3 = arith.constant 0 : index
    %c0_4 = arith.constant 0 : index
    %4 = vector.load %arg2[%c0_3, %c0_4] : memref<4x2xf32, #tpu.memory_space<vmem>>, vector<4x2xf32>
    %cst_5 = arith.constant dense<0.000000e+00> : vector<2x2xf32>
    %5 = tpu.matmul %3, %4, %cst_5 {dimension_numbers = #tpu.dot_dimension_numbers<[1], [0], [0], [1], [0, 0, 1, 1], [], []>} : vector<2x4xf32>, vector<4x2xf32>, vector<2x2xf32> -> vector<2x2xf32>
    %cst_6 = arith.constant 0.000000e+00 : f32
    %6 = vector.broadcast %cst_6 : f32 to vector<2x2xf32>
    %7 = arith.maximumf %5, %6 : vector<2x2xf32>
    %c0_7 = arith.constant 0 : index
    %c0_8 = arith.constant 0 : index
    %8 = vector.load %arg3[%c0_7, %c0_8] : memref<2x4xf32, #tpu.memory_space<vmem>>, vector<2x4xf32>
    %cst_9 = arith.constant dense<0.000000e+00> : vector<2x4xf32>
    %9 = tpu.matmul %7, %8, %cst_9 {dimension_numbers = #tpu.dot_dimension_numbers<[1], [0], [0], [1], [0, 0, 1, 1], [], []>} : vector<2x2xf32>, vector<2x4xf32>, vector<2x4xf32> -> vector<2x4xf32>
    %10 = arith.negf %9 : vector<2x4xf32>
    %11 = math.exp %10 : vector<2x4xf32>
    %cst_10 = arith.constant 1.000000e+00 : f32
    %12 = vector.broadcast %cst_10 : f32 to vector<2x4xf32>
    %13 = arith.addf %12, %11 : vector<2x4xf32>
    %14 = arith.divf %12, %13 : vector<2x4xf32>
    %c0_11 = arith.constant 0 : index
    %c0_12 = arith.constant 0 : index
    %c0_13 = arith.constant 0 : index
    %15 = vector.load %arg1[%c0_11, %c0_12, %c0_13] : memref<2x4x256xf32, #tpu.memory_space<vmem>>, vector<2x4x256xf32>
    %16 = vector.shape_cast %14 : vector<2x4xf32> to vector<2x4x1xf32>
    %17 = vector.broadcast %16 : vector<2x4x1xf32> to vector<2x4x256xf32>
    %18 = arith.mulf %15, %17 : vector<2x4x256xf32>
    %c0_14 = arith.constant 0 : index
    %c0_15 = arith.constant 0 : index
    %c0_16 = arith.constant 0 : index
    %19 = vector.load %arg4[%c0_14, %c0_15, %c0_16] : memref<2x4x256xf32, #tpu.memory_space<vmem>>, vector<2x4x256xf32>
    tpu.vector_store %arg4[%c0_14, %c0_15, %c0_16], %18 {strides = array<i32>} : memref<2x4x256xf32, #tpu.memory_space<vmem>>, vector<2x4x256xf32>,
    return
  }
  func.func @transform_0(%arg0: i32) -> (i32, i32, i32) {
    %c0_i32 = arith.constant 0 : i32
    %c0_i32_0 = arith.constant 0 : i32
    %c0_i32_1 = arith.constant 0 : i32
    return %arg0, %c0_i32, %c0_i32_0 : i32, i32, i32
  }
  func.func @transform_1(%arg0: i32) -> (i32, i32) {
    %c0_i32 = arith.constant 0 : i32
    %c0_i32_0 = arith.constant 0 : i32
    %c0_i32_1 = arith.constant 0 : i32
    return %c0_i32, %c0_i32_0 : i32, i32
  }
  func.func @transform_2(%arg0: i32) -> (i32, i32) {
    %c0_i32 = arith.constant 0 : i32
    %c0_i32_0 = arith.constant 0 : i32
    %c0_i32_1 = arith.constant 0 : i32
    return %c0_i32, %c0_i32_0 : i32, i32
  }
  func.func @transform_3(%arg0: i32) -> (i32, i32, i32) {
    %c0_i32 = arith.constant 0 : i32
    %c0_i32_0 = arith.constant 0 : i32
    %c0_i32_1 = arith.constant 0 : i32
    return %arg0, %c0_i32, %c0_i32_0 : i32, i32, i32
  }
}

</mosaic_0001>

<bundles_post_ra>
// kernel: tpu_custom_call.1
= control target key start
LH: loop header
LB: loop body
LE: loop exit
PB: predicated region body
PF: predicated region fallthrough
CT: control target
= control target key end

     0   :  { %8 = vsyncpa [#allocation3], 0  ;;  %s413_s0 = inlined_call_operand.hbm [shape: f32[2,4,256], index: 0, kind: input, shape index: {}]   ;;  %s414_s1 = inlined_call_operand.vmem [shape: f32[4,2], index: 1, kind: input, shape index: {}]   ;;  %s415_s2 = inlined_call_operand.vmem [shape: f32[2,4], index: 2, kind: input, shape index: {}]   ;;  %s416_s3 = inlined_call_operand.hbm [shape: f32[2,4,256], index: 3, kind: output, shape index: {}]  }
   0x1   :  { %9 = vsyncpa [#allocation4], 0  ;;  %s357_s12 = smov [#allocation2]  }
   0x2   :  { %s15_s13 = sshll.u32 %s357_s12, 4  ;;  %s16_s13 = int_to_ptr.vmem [resolvable:$true] %s15_s13 }
   0x3   :  { %s321_s14 = scalar_lea.vmem %s16_s13, 256  ;;  %p326_p1 = scmp.lt.s32.totalorder %s16_s13, %s16_s13 }
   0x4   :  { %p322_p0 = scmp.ne.s32.totalorder %s16_s13, %s321_s14  ;;  %p327_p2 = scmp.lt.s32.totalorder %s321_s14, %s321_s14 }
   0x6   :  { %p328_p3 = por %p327_p2, %p326_p1 }
   0x8   :  { %p329_p4 = pnand %p328_p3, %p322_p0 }
   0xa   :  { %332 = shalt.err (!%p329_p4)
}
   0xb   :  { %s358_s15 = smov 128   ;;  %s359_s16 = smov 8  }
   0xc   :  { %21 = dma.hbm_to_vmem [thread:$0]  %s413_s0, 256, %s16_s13, [#allocation3], %s358_s15, %s358_s15, %s359_s16  }
   0xd   :  { %353 = dma.done.wait [#allocation3], 256  }
   0xe   :  { %354 = vsyncadd [#allocation3], 4294967040  ;;  %vm37_vm0 = vcmask 1043456   ;;  %v29_v0 = vld [vmem:[#allocation2] sm:$0xff]  ;;  %v390_v1 = vld [vmem:[#allocation2 + $0x8] sm:$0xff]  ;;  %v360_v11 = vmov 0.0   ;;  %v54_v12 = vlaneseq }
   0xf   :  { %v33_v2 = vcombine.high %v29_v0, %v29_v0  ;;  %v38_v3 = vsel %vm37_vm0, %v29_v0, 0.0  ;;  %v34_v4 = vcombine.high %v390_v1, %v390_v1  ;;  %v43_v6 = vsel %vm37_vm0, %v390_v1, 0.0  ;;  %v51_v10 = vld [vmem:[%s414_s1] sm:$0xf]  ;;  %290 = vmatprep.subr.mxu0 %v360_v11  ;;  %295 = vmatprep.subr.mxu1 %v360_v11 }
  0x10   :  { %vm361_vm1 = vmmov 0   ;;  %291 = vmatpush3.msk.msra.mxu0 %vm37_vm0, %v51_v10  ;;  %v55_v13 = vand.u32 127, %v54_v12  ;;  %v57_v14 = vshrl.u32 %v54_v12, 7  ;;  %vm64_vm2 = vcmask 1041409   ;;  %v143_v23 = vld [vmem:[%s415_s2] sm:$0x3] }
  0x11   :  { %v39_v5 = vsel %vm37_vm0, %v33_v2, 0.0  ;;  %v44_v7 = vsel %vm37_vm0, %v34_v4, 0.0  ;;  %292 = vmatprep.mubr.msk.f32.mxu0 %vm361_vm1, %v360_v11  ;;  %297 = vmatprep.mubr.msk.f32.mxu1 %vm361_vm1, %v360_v11  ;;  %vm66_vm3 = vcmask 31744   ;;  %vm148_vm4 = vcmask 1041408   ;;  %s363_s2 = smov [#allocation5]  }
  0x12   :  { %v40_v8 = vadd.f32 %v39_v5, %v38_v3  ;;  %v45_v9 = vadd.f32 %v44_v7, %v43_v6  ;;  %v58_v16 = vsub.s32 %v55_v13, %v57_v14  ;;  %296 = vmatpush3.msk.msra.mxu1 %vm148_vm4, %v143_v23  ;;  %vm144_vm5 = vcmask 15360   ;;  %s269_s21 = sshll.u32 %s363_s2, 4  ;;  %s270_s21 = int_to_ptr.vmem [resolvable:$true] %s269_s21 }
  0x13   :  { %v230_v32 = vsub.s32 0, %v57_v14  ;;  %v237_v35 = vsub.s32 1, %v57_v14  ;;  %v362_v37 = vmov 839922192   ;;  %s333_s22 = scalar_lea.vmem %s270_s21, 256  ;;  %p338_p6 = scmp.lt.s32.totalorder %s270_s21, %s270_s21 }
  0x14   :  { %41 = vadd.xlane.f32.xlu0 %v40_v8  ;;  %v245_v38 = vunpack.c.l.s4 %v362_v37  ;;  %p334_p5 = scmp.ne.s32.totalorder %s270_s21, %s333_s22  ;;  %p339_p7 = scmp.lt.s32.totalorder %s333_s22, %s333_s22 }
  0x16   :  { %v246_v39 = vunpack.c.0.s8 %v245_v38  ;;  %p340_p8 = por %p339_p7, %p338_p6 }
  0x18   :  { %46 = vadd.xlane.f32.xlu0 %v45_v9  ;;  %v249_v40 = vsub.s32 %v246_v39, %v57_v14  ;;  %p341_p9 = pnand %p340_p8, %p334_p5 }
  0x9d   :  { %v42_v15 = vpop.xlane.xlu0 %41 }
  0x9e   :  { %v49_v17 = vmul.f32 0.00390625, %v42_v15 }
  0xa0   :  { %v59_v20 = vrot.slane %v49_v17, %v58_v16 }
  0xa1   :  { %v47_v18 = vpop.xlane.xlu0 %46 }
  0xa2   :  { %v50_v19 = vmul.f32 0.00390625, %v47_v18 }
  0xa4   :  { %v63_v21 = vrot.slane %v50_v19, %v58_v16 }
  0xa6   :  { %v65_v22 = vsel %vm64_vm2, %v63_v21, %v59_v20 }
  0xa7   :  { %293 = vmatmul.mubr.msk.f32.vlgmr.msra.gmra.mxu0 %vm66_vm3, %v65_v22 }
 0x167   :  { %v138_v24 = vpop.f32.mrf.mxu0 }
 0x168   :  { %v142_v25 = vmax.f32 %v138_v24, 0.0 }
 0x169   :  { %v294_v26 = vpop.f32.mrf.mxu0 }
 0x16a   :  { %298 = vmatmul.mubr.msk.f32.vlgmr.msra.gmra.mxu1 %vm144_vm5, %v142_v25 }
 0x22a   :  { %v218_v27 = vpop.f32.mrf.mxu1 }
 0x22b   :  { %v285_v28 = vmul.f32 -1.442695, %v218_v27 }
 0x22c   :  { %v299_v29 = vpop.f32.mrf.mxu1 }
 0x22d   :  { %309 = vpow2.f32 %v285_v28 }
 0x23a   :  { %v310_v30 = vpop.eup %309 }
 0x23b   :  { %v225_v31 = vadd.f32 1.0, %v310_v30 }
 0x23d   :  { %311 = vrcp.f32 %v225_v31 }
 0x24a   :  { %v312_v33 = vpop.eup %311 }
 0x24b   :  { %v231_v34 = vrot.slane %v312_v33, %v230_v32  ;;  %v238_v36 = vrot.slane %v312_v33, %v237_v35 }
 0x24d   :  { %233 = vbcast.lane.b32.xlu1 %v231_v34, 256 }
 0x251   :  { %240 = vbcast.lane.b32.xlu1 %v238_v36, 256 }
 0x2bf   :  { %v234_v41 = vpop.permute.xlu1 %233 }
 0x2c0   :  { %v250_v42 = vrot.slane %v234_v41, %v249_v40 }
 0x2c2   :  { %v260_v43 = vmul.f32 %v250_v42, %v29_v0 }
 0x2c3   :  { %v241_v44 = vpop.permute.xlu1 %240 }
 0x2c4   :  { %262 = vst [vmem:[#allocation5] sm:$0xff] %v260_v43  ;;  %v257_v45 = vrot.slane %v241_v44, %v249_v40 }
 0x2c6   :  { %v261_v46 = vmul.f32 %v257_v45, %v390_v1 }
 0x2c8   :  { %263 = vst [vmem:[#allocation5 + $0x8] sm:$0xff] %v261_v46 }
 0x2c9   :  { %344 = shalt.err (!%p341_p9)
}
 0x2ca   :  { %275 = dma.vmem_to_hbm [thread:$0]  %s270_s21, 256, %s416_s3, [#allocation4], %s358_s15, %s358_s15, %s359_s16  }
 0x2cb   :  { %355 = dma.done.wait [#allocation4], 256  }
 0x2cc   :  { %356 = vsyncadd [#allocation4], 4294967040 }
 0x2cd   :  { %279 = vsyncpa [#allocation3], 1 }
 0x2ce   :  { %280 = vsyncpa [#allocation4], 1 }

</bundles_post_ra>
